<compile_context>
chip_gen: v6e
topology: v6e:2x2x1
jax: 0.10.0
libtpu: 0.0.40
codegen_flags: <defaults>
</compile_context>

<pallas_src>
import functools

import jax
import jax.numpy as jnp
import numpy as np
from jax.experimental import pallas as pl
from jax.experimental.pallas import tpu as pltpu


def _round_up(x, m):
    return ((x + m - 1) // m) * m


@functools.lru_cache(maxsize=None)
def _tpu_tuning():
    """Returns (target_block_bytes, vmem_limit_cap_bytes, prefer_multi_step)."""
    vmem_capacity = 0
    try:
        info = pltpu.get_tpu_info()
        vmem_capacity = int(getattr(info, "vmem_capacity_bytes", 0) or 0)
    except Exception:
        vmem_capacity = 0
    if vmem_capacity >= (100 << 20):
        # v5e / v6e: 128 MiB VMEM, single TensorCore -> biggest block that fits.
        return (8 << 20, 96 << 20, False)
    # v7x (64 MiB VMEM per TC, 2 TCs) or unknown generation: smaller blocks,
    # keep >= 8 grid steps for megacore sharding, conservative scoped limit.
    return (4 << 20, 48 << 20, True)


def _pick_row_block(nc, hw_pad, row_align, target_block_bytes, prefer_multi_step):
    """Rows-per-block: ~target_block_bytes f32 working set per block, rows
    aligned for the dtype's sublane packing, never larger than the row dim."""
    if nc <= row_align:
        return nc  # single block spanning the (small) row dim exactly
    bytes_per_row = hw_pad * 4  # budget against the f32 working set
    min_block_bytes = 512 << 10

    rb = max(row_align, (target_block_bytes // bytes_per_row) // row_align * row_align)
    rb = min(rb, (nc // row_align) * row_align)
    if prefer_multi_step:
        # v7x only: prefer >= 8 grid steps so both TensorCores stay busy, but
        # never shrink a block below ~512 KiB (per-step overhead dominates).
        while (-(-nc // rb) < 8 and rb > row_align
               and (rb // 2) * bytes_per_row >= min_block_bytes):
            rb = max(row_align, ((rb // 2) // row_align) * row_align)
    return rb


def _instance_norm_kernel(x_ref, g_ref, b_ref, o_ref, *, eps, inv_count):
    """One grid step normalizes `rb` (sample, channel) instances.

    x_ref : (rb, HW)  input tile (HW may be lane-unaligned; Mosaic masks the
                      physical padding lanes in the reductions)
    g_ref : (rb, 1)   per-row gamma (f32), tiny per-step DMA
    b_ref : (rb, 1)   per-row beta  (f32)
    o_ref : (rb, HW)
    """
    x = x_ref[...].astype(jnp.float32)

    # Two-pass statistics: mean, then centered variance.  The tile is already
    # resident in VMEM, so the second reduction is free at the HBM roofline
    # and avoids E[x^2] - mean^2 cancellation.  Biased variance == PyTorch
    # InstanceNorm2d.
    mean = jnp.sum(x, axis=-1, keepdims=True) * inv_count
    d = x - mean
    var = jnp.sum(d * d, axis=-1, keepdims=True) * inv_count
    inv = jax.lax.rsqrt(var + eps)

    # Fold gamma into a per-row scale (narrow-column ops); the full-width VPU
    # work is then one multiply + one add per element.
    scale = inv * g_ref[...]
    o_ref[...] = (d * scale + b_ref[...]).astype(o_ref.dtype)


@functools.partial(jax.jit, static_argnames=("eps",))
def _instance_norm_pallas(x, gamma, beta, *, eps=1e-5):
    """InstanceNorm2d(affine=True): per-(sample, channel) normalization over
    the spatial dims of an NCHW input, implemented with a Pallas TPU kernel."""
    N, C, H, W = x.shape
    NC, HW = N * C, H * W
    itemsize = jnp.dtype(x.dtype).itemsize
    row_align = max(8, 32 // itemsize)   # f32: 8, bf16: 16, int8/fp8: 32
    hw_pad = _round_up(HW, 128)          # physical lane padding (budgeting only)

    target_block_bytes, vmem_cap, prefer_multi_step = _tpu_tuning()
    rb = _pick_row_block(NC, hw_pad, row_align, target_block_bytes, prefer_multi_step)
    num_blocks = -(-NC // rb)
    # TODO(synk): for spatial extents so large that even a minimum-height block
    # overflows v7x's 64 MiB VMEM, split HW across a second "arbitrary" grid
    # axis with resident partial sum / sum-of-squares accumulators (two-phase).

    # Free reshape (contiguous NCHW); no jnp.pad / output-slice HBM passes.
    x2 = x.reshape(NC, HW)

    # Per-row affine params (one row == one (sample, channel) instance).
    g = jnp.broadcast_to(gamma.astype(jnp.float32)[None, :], (N, C)).reshape(NC, 1)
    b = jnp.broadcast_to(beta.astype(jnp.float32)[None, :], (N, C)).reshape(NC, 1)

    # Scoped VMEM: double-buffered in+out plus in-kernel f32 temporaries.
    rb_phys = _round_up(rb, row_align)
    block_io_bytes = rb_phys * hw_pad * itemsize
    block_f32_bytes = rb_phys * hw_pad * 4
    vmem_limit = int(min(
        vmem_cap,
        max(32 << 20, 4 * block_io_bytes + 3 * block_f32_bytes + (2 << 20))))

    kernel = functools.partial(_instance_norm_kernel, eps=eps, inv_count=1.0 / HW)

    out = pl.pallas_call(
        kernel,
        out_shape=jax.ShapeDtypeStruct((NC, HW), x.dtype),
        grid=(num_blocks,),
        in_specs=[
            pl.BlockSpec((rb, HW), lambda i: (i, 0)),
            pl.BlockSpec((rb, 1), lambda i: (i, 0)),   # per-block gamma
            pl.BlockSpec((rb, 1), lambda i: (i, 0)),   # per-block beta
        ],
        out_specs=pl.BlockSpec((rb, HW), lambda i: (i, 0)),
        compiler_params=pltpu.CompilerParams(
            dimension_semantics=("parallel",),
            vmem_limit_bytes=vmem_limit,
        ),
    )(x2, g, b)

    return out.reshape(N, C, H, W)


class SwitchingNormalization:
    """JAX/Pallas port of the PyTorch `switching_normalization` module."""

    def __init__(self, output_channels, key, eps=1e-5):
        k0, k1, k2, k3 = jax.random.split(key, 4)
        # Two independent parameter sets (norm0 / norm1).  PyTorch initializes
        # InstanceNorm affine params to (1, 0); small deterministic
        # perturbations keep the two branches distinguishable.
        self.params0 = (
            1.0 + 0.1 * jax.random.normal(k0, (output_channels,), jnp.float32),
            0.1 * jax.random.normal(k1, (output_channels,), jnp.float32),
        )
        self.params1 = (
            1.0 + 0.1 * jax.random.normal(k2, (output_channels,), jnp.float32),
            0.1 * jax.random.normal(k3, (output_channels,), jnp.float32),
        )
        self.eps = eps
        self.mode = 0

    def set_mode(self, mode):
        assert mode in [0, 1]
        self.mode = mode

    def __call__(self, x):
        if self.mode == 0:
            gamma, beta = self.params0
        else:
            gamma, beta = self.params1
        return _instance_norm_pallas(x, gamma, beta, eps=self.eps)


def _reference(x, gamma, beta, eps=1e-5):
    xf = x.astype(jnp.float32)
    mean = jnp.mean(xf, axis=(2, 3), keepdims=True)
    var = jnp.mean((xf - mean) ** 2, axis=(2, 3), keepdims=True)
    y = (xf - mean) / jnp.sqrt(var + eps)
    return y * gamma[None, :, None, None] + beta[None, :, None, None]


if __name__ == "__main__":
    key = jax.random.PRNGKey(0)
    k_x, k_x2, k_p, k_p2 = jax.random.split(key, 4)

    # --- aligned shapes (fast path) ---
    N, C, H, W = 2, 4, 16, 16
    x = jax.random.normal(k_x, (N, C, H, W), jnp.float32)
    module = SwitchingNormalization(C, k_p)

    module.set_mode(0)
    y0 = module(x)
    jax.block_until_ready(y0)
    ref0 = _reference(x, *module.params0)

    module.set_mode(1)
    y1 = module(x)
    jax.block_until_ready(y1)
    ref1 = _reference(x, *module.params1)

    assert y0.shape == x.shape and y0.dtype == x.dtype
    np.testing.assert_allclose(np.asarray(y0), np.asarray(ref0), rtol=1e-5, atol=1e-5)
    np.testing.assert_allclose(np.asarray(y1), np.asarray(ref1), rtol=1e-5, atol=1e-5)

    # --- unaligned shapes (exercise the edge-block / masked-lane path) ---
    N2, C2, H2, W2 = 2, 5, 7, 20
    xb = jax.random.normal(k_x2, (N2, C2, H2, W2), jnp.float32)
    module_b = SwitchingNormalization(C2, k_p2)
    module_b.set_mode(0)
    yb = module_b(xb)
    jax.block_until_ready(yb)
    refb = _reference(xb, *module_b.params0)
    assert yb.shape == xb.shape and yb.dtype == xb.dtype
    np.testing.assert_allclose(np.asarray(yb), np.asarray(refb), rtol=1e-5, atol=1e-5)

    print("KERNEL_OK")
</pallas_src>

<mosaic_0001>
module attributes {stable_mosaic.version = 11 : i64} {
  func.func @_instance_norm_kernel(%arg0: i32, %arg1: memref<8x256xf32, #tpu.memory_space<vmem>>, %arg2: memref<8x1xf32, #tpu.memory_space<vmem>>, %arg3: memref<8x1xf32, #tpu.memory_space<vmem>>, %arg4: memref<8x256xf32, #tpu.memory_space<vmem>>) attributes {dimension_semantics = [#tpu.dimension_semantics<parallel>], iteration_bounds = array<i64: 1>, scalar_prefetch = 0 : i64, scratch_operands = 0 : i64, tpu.core_type = #tpu.core_type<tc>, window_params = [{transform_indices = @transform_0, window_bounds = array<i64: 8, 256>}, {transform_indices = @transform_1, window_bounds = array<i64: 8, 1>}, {transform_indices = @transform_2, window_bounds = array<i64: 8, 1>}, {transform_indices = @transform_3, window_bounds = array<i64: 8, 256>}]} {
    %c0 = arith.constant 0 : index
    %c0_0 = arith.constant 0 : index
    %0 = vector.load %arg1[%c0, %c0_0] : memref<8x256xf32, #tpu.memory_space<vmem>>, vector<8x256xf32>
    %cst = arith.constant dense<0.000000e+00> : vector<8xf32>
    %1 = vector.multi_reduction <add>, %0, %cst [1] : vector<8x256xf32> to vector<8xf32>
    %2 = vector.shape_cast %1 : vector<8xf32> to vector<8x1xf32>
    %cst_1 = arith.constant 3.906250e-03 : f32
    %3 = vector.broadcast %cst_1 : f32 to vector<8x1xf32>
    %4 = arith.mulf %2, %3 : vector<8x1xf32>
    %5 = vector.broadcast %4 : vector<8x1xf32> to vector<8x256xf32>
    %6 = arith.subf %0, %5 : vector<8x256xf32>
    %7 = arith.mulf %6, %6 : vector<8x256xf32>
    %cst_2 = arith.constant dense<0.000000e+00> : vector<8xf32>
    %8 = vector.multi_reduction <add>, %7, %cst_2 [1] : vector<8x256xf32> to vector<8xf32>
    %9 = vector.shape_cast %8 : vector<8xf32> to vector<8x1xf32>
    %cst_3 = arith.constant 3.906250e-03 : f32
    %10 = vector.broadcast %cst_3 : f32 to vector<8x1xf32>
    %11 = arith.mulf %9, %10 : vector<8x1xf32>
    %cst_4 = arith.constant 9.99999974E-6 : f32
    %12 = vector.broadcast %cst_4 : f32 to vector<8x1xf32>
    %13 = arith.addf %11, %12 : vector<8x1xf32>
    %14 = math.rsqrt %13 : vector<8x1xf32>
    %c0_5 = arith.constant 0 : index
    %c0_6 = arith.constant 0 : index
    %15 = vector.load %arg2[%c0_5, %c0_6] : memref<8x1xf32, #tpu.memory_space<vmem>>, vector<8x1xf32>
    %16 = arith.mulf %14, %15 : vector<8x1xf32>
    %17 = vector.broadcast %16 : vector<8x1xf32> to vector<8x256xf32>
    %18 = arith.mulf %6, %17 : vector<8x256xf32>
    %c0_7 = arith.constant 0 : index
    %c0_8 = arith.constant 0 : index
    %19 = vector.load %arg3[%c0_7, %c0_8] : memref<8x1xf32, #tpu.memory_space<vmem>>, vector<8x1xf32>
    %20 = vector.broadcast %19 : vector<8x1xf32> to vector<8x256xf32>
    %21 = arith.addf %18, %20 : vector<8x256xf32>
    %c0_9 = arith.constant 0 : index
    %c0_10 = arith.constant 0 : index
    %22 = vector.load %arg4[%c0_9, %c0_10] : memref<8x256xf32, #tpu.memory_space<vmem>>, vector<8x256xf32>
    tpu.vector_store %arg4[%c0_9, %c0_10], %21 {strides = array<i32>} : memref<8x256xf32, #tpu.memory_space<vmem>>, vector<8x256xf32>,
    return
  }
  func.func @transform_0(%arg0: i32) -> (i32, i32) {
    %c0_i32 = arith.constant 0 : i32
    %c0_i32_0 = arith.constant 0 : i32
    return %arg0, %c0_i32 : i32, i32
  }
  func.func @transform_1(%arg0: i32) -> (i32, i32) {
    %c0_i32 = arith.constant 0 : i32
    %c0_i32_0 = arith.constant 0 : i32
    return %arg0, %c0_i32 : i32, i32
  }
  func.func @transform_2(%arg0: i32) -> (i32, i32) {
    %c0_i32 = arith.constant 0 : i32
    %c0_i32_0 = arith.constant 0 : i32
    return %arg0, %c0_i32 : i32, i32
  }
  func.func @transform_3(%arg0: i32) -> (i32, i32) {
    %c0_i32 = arith.constant 0 : i32
    %c0_i32_0 = arith.constant 0 : i32
    return %arg0, %c0_i32 : i32, i32
  }
}

</mosaic_0001>

<bundles_post_ra>
// kernel: _instance_norm_pallas.1
= control target key start
LH: loop header
LB: loop body
LE: loop exit
PB: predicated region body
PF: predicated region fallthrough
CT: control target
= control target key end

     0   :  { %v58_v10 = vmov 0   ;;  %s97_s0 = inlined_call_operand.vmem [shape: f32[8,256], index: 0, kind: input, shape index: {}]   ;;  %s98_s1 = inlined_call_operand.vmem [shape: f32[8,1], index: 1, kind: input, shape index: {}]   ;;  %s99_s2 = inlined_call_operand.vmem [shape: f32[8,1], index: 2, kind: input, shape index: {}]   ;;  %s100_s3 = inlined_call_operand.vmem [shape: f32[8,256], index: 3, kind: output, shape index: {}]  }
   0x1   :  { %v14_v0 = vld [vmem:[%s97_s0] sm:$0xff]  ;;  %v15_v1 = vld [vmem:[%s97_s0 + $0x8] sm:$0xff]  ;;  %54 = vset.pattern.permute.xlu1 %v58_v10  ;;  %55 = vset.pattern.permute.xlu0 %v58_v10 }
   0x2   :  { %v16_v2 = vadd.f32 %v15_v1, %v14_v0  ;;  %v30_v14 = vld [vmem:[%s98_s1] sm:$0xff] }
   0x3   :  { %v39_v17 = vld [vmem:[%s99_s2] sm:$0xff] }
   0x4   :  { %17 = vadd.xlane.f32.xlu0 %v16_v2 }
  0x8d   :  { %v18_v3 = vpop.xlane.xlu0 %17 }
  0x8e   :  { %v19_v4 = vmul.f32 0.00390625, %v18_v3 }
  0x90   :  { %v20_v5 = vsub.f32 %v14_v0, %v19_v4  ;;  %v21_v6 = vsub.f32 %v15_v1, %v19_v4 }
  0x92   :  { %v22_v7 = vmul.f32 %v20_v5, %v20_v5  ;;  %v23_v8 = vmul.f32 %v21_v6, %v21_v6 }
  0x94   :  { %v24_v9 = vadd.f32 %v23_v8, %v22_v7 }
  0x96   :  { %25 = vadd.xlane.f32.xlu0 %v24_v9 }
 0x11f   :  { %v26_v11 = vpop.xlane.xlu0 %25 }
 0x120   :  { %v27_v12 = vmul.f32 0.00390625, %v26_v11 }
 0x122   :  { %v28_v13 = vadd.f32 1e-05, %v27_v12 }
 0x124   :  { %56 = vrsqrt.f32 %v28_v13 }
 0x131   :  { %v57_v15 = vpop.eup %56 }
 0x132   :  { %v31_v16 = vmul.f32 %v57_v15, %v30_v14 }
 0x134   :  { %34 = vperm.xlu1 %54, %v31_v16  }
 0x138   :  { %42 = vperm.xlu1 %54, %v39_v17  }
 0x1af   :  { %v35_v18 = vpop.permute.xlu1 %34 }
 0x1b0   :  { %v37_v19 = vmul.f32 %v35_v18, %v20_v5  ;;  %v38_v20 = vmul.f32 %v35_v18, %v21_v6 }
 0x1b3   :  { %v43_v21 = vpop.permute.xlu1 %42 }
 0x1b4   :  { %v45_v22 = vadd.f32 %v43_v21, %v37_v19  ;;  %v46_v23 = vadd.f32 %v43_v21, %v38_v20 }
 0x1b6   :  { %47 = vst [vmem:[%s100_s3] sm:$0xff] %v45_v22  ;;  %48 = vst [vmem:[%s100_s3 + $0x8] sm:$0xff] %v46_v23 }

</bundles_post_ra>
